<compile_context>
chip_gen: v7x
topology: tpu7x:2x2x1
jax: 0.10.0
libtpu: 0.0.40
codegen_flags: <defaults>
</compile_context>

<pallas_src>
import functools
import math

import jax
import jax.numpy as jnp
from jax import lax
from jax.experimental import pallas as pl
from jax.experimental.pallas import tpu as pltpu

EPS = 1e-5
INV_SQRT2 = 0.7071067811865476


# ----------------------------------------------------------------------------
# Patch-embedding matmul (batch-pipelined, bf16 output, bias folded into base)
# ----------------------------------------------------------------------------
def _embed_kernel(x_ref, w_ref, o_ref):
    o_ref[0] = jnp.dot(
        x_ref[0], w_ref[...], preferred_element_type=jnp.float32
    ).astype(o_ref.dtype)


def embed_pallas(patches_pad, w_bf16):
    """patches_pad: (B, S_pad, K) bf16 (row 0 and pad rows are zero)."""
    B, S, K = patches_pad.shape
    D = w_bf16.shape[1]
    return pl.pallas_call(
        _embed_kernel,
        out_shape=jax.ShapeDtypeStruct((B, S, D), jnp.bfloat16),
        grid=(B,),
        in_specs=[
            pl.BlockSpec((1, S, K), lambda b: (b, 0, 0)),
            pl.BlockSpec((K, D), lambda b: (0, 0)),
        ],
        out_specs=pl.BlockSpec((1, S, D), lambda b: (b, 0, 0)),
        compiler_params=pltpu.CompilerParams(dimension_semantics=("parallel",)),
    )(patches_pad, w_bf16)


# ----------------------------------------------------------------------------
# Fused encoder stack + final LN + classifier
#   grid = (B // TB, L); activations resident in VMEM across the layer axis
# ----------------------------------------------------------------------------
def _encoder_stack_kernel(
    x_ref, base_ref, mask_ref,
    g1_ref, b1_ref, wqkv_ref, bqkv_ref, wo_ref, bo_ref,
    g2_ref, b2_ref, w1_ref, bb1_ref, w2_ref, bb2_ref,
    lng_ref, lnb_ref, cw_ref, cb_ref,
    o_ref,
    act_ref,
    *, heads, head_dim, inv_scale, tb, s_pad,
):
    l = pl.program_id(1)
    n_layers = pl.num_programs(1)
    D = heads * head_dim
    M = tb * s_pad

    # Layer 0: tokens = patch_embedding + (cls/pos/conv-bias) base.
    @pl.when(l == 0)
    def _():
        tok = x_ref[...].astype(jnp.float32) + base_ref[...]     # (TB, S, D)
        act_ref[...] = tok.reshape(M, D)

    x = act_ref[...]                                             # (TB*S, D) f32

    # --- LayerNorm 1 (f32 stats) ---
    mu = jnp.mean(x, axis=-1, keepdims=True)
    var = jnp.mean((x - mu) ** 2, axis=-1, keepdims=True)
    xn = (x - mu) * lax.rsqrt(var + EPS) * g1_ref[0] + b1_ref[0]

    # --- Fused QKV projection over the whole batch block (bf16 MXU) ---
    qkv = (
        jnp.dot(xn.astype(jnp.bfloat16), wqkv_ref[0],
                preferred_element_type=jnp.float32)
        + bqkv_ref[0]
    )                                                            # (M, 3D)
    q = qkv[:, :D] * inv_scale                   # fold 1/sqrt(hd) into q
    k = qkv[:, D:2 * D]
    v = qkv[:, 2 * D:]

    add_mask = mask_ref[...][:, None, :]                         # (1, 1, S)

    # --- Multi-head attention, per-sequence (TB is small & static) ---
    attn_parts = []
    for i in range(tb):
        rows = slice(i * s_pad, (i + 1) * s_pad)
        qh = jnp.swapaxes(q[rows].reshape(s_pad, heads, head_dim), 0, 1)
        kh = jnp.swapaxes(k[rows].reshape(s_pad, heads, head_dim), 0, 1)
        vh = jnp.swapaxes(v[rows].reshape(s_pad, heads, head_dim), 0, 1)
        s = jnp.einsum("hqd,hkd->hqk",
                       qh.astype(jnp.bfloat16), kh.astype(jnp.bfloat16),
                       preferred_element_type=jnp.float32)       # (H, S, S)
        s = s + add_mask                                         # mask pad keys
        s = s - jnp.max(s, axis=-1, keepdims=True)
        p = jnp.exp(s)
        p = p * pl.reciprocal(jnp.sum(p, axis=-1, keepdims=True), approx=True)
        ctx = jnp.einsum("hqk,hkd->hqd",
                         p.astype(jnp.bfloat16), vh.astype(jnp.bfloat16),
                         preferred_element_type=jnp.float32)     # (H, S, hd)
        attn_parts.append(jnp.swapaxes(ctx, 0, 1).reshape(s_pad, D))
    attn = jnp.concatenate(attn_parts, axis=0) if tb > 1 else attn_parts[0]

    attn_out = (
        jnp.dot(attn.astype(jnp.bfloat16), wo_ref[0],
                preferred_element_type=jnp.float32)
        + bo_ref[0]
    )
    x1 = x + attn_out                                            # residual

    # --- LayerNorm 2 ---
    mu2 = jnp.mean(x1, axis=-1, keepdims=True)
    var2 = jnp.mean((x1 - mu2) ** 2, axis=-1, keepdims=True)
    xn2 = (x1 - mu2) * lax.rsqrt(var2 + EPS) * g2_ref[0] + b2_ref[0]

    # --- MLP (exact GELU, matching torch nn.GELU default) ---
    h1 = (
        jnp.dot(xn2.astype(jnp.bfloat16), w1_ref[0],
                preferred_element_type=jnp.float32)
        + bb1_ref[0]
    )
    h1 = 0.5 * h1 * (1.0 + lax.erf(h1 * INV_SQRT2))
    h2 = (
        jnp.dot(h1.astype(jnp.bfloat16), w2_ref[0],
                preferred_element_type=jnp.float32)
        + bb2_ref[0]
    )

    out = x1 + h2
    act_ref[...] = out                       # layer carry (VMEM-resident)

    # Last layer: fused final LayerNorm + classifier on the cls token only.
    # Single gated (TB, Cp) store -- no (B, S, D) HBM writeback.
    @pl.when(l == n_layers - 1)
    def _():
        cls_tok = out.reshape(tb, s_pad, D)[:, 0, :]             # (TB, D)
        mu3 = jnp.mean(cls_tok, axis=-1, keepdims=True)
        var3 = jnp.mean((cls_tok - mu3) ** 2, axis=-1, keepdims=True)
        cn = (cls_tok - mu3) * lax.rsqrt(var3 + EPS) * lng_ref[...] + lnb_ref[...]
        logits = (
            jnp.dot(cn.astype(jnp.bfloat16), cw_ref[...],
                    preferred_element_type=jnp.float32)
            + cb_ref[...]
        )
        o_ref[0] = logits


def encoder_stack_pallas(emb, base, mask, layers, ln_g, ln_b, cls_w, cls_b,
                         *, heads, tb):
    B, S, D = emb.shape
    L = layers["g1"].shape[0]
    head_dim = D // heads
    inv_scale = 1.0 / (float(head_dim) ** 0.5)
    nb = B // tb
    Cp = cls_w.shape[1]
    mlp_dim = layers["w1"].shape[2]

    names = ["g1", "b1", "wqkv", "bqkv", "wo", "bo",
             "g2", "b2", "w1", "bb1", "w2", "bb2"]
    plist = [layers[n] for n in names]

    def layer_spec(p):
        nd = p.ndim
        return pl.BlockSpec((1,) + p.shape[1:],
                            lambda b, l, _nd=nd: (l,) + (0,) * (_nd - 1))

    def const_spec(p):
        nd = p.ndim
        return pl.BlockSpec(p.shape, lambda b, l, _nd=nd: (0,) * _nd)

    # Explicit VMEM budget: double-buffered per-layer bf16 weights dominate;
    # add the resident activation slab, f32 intermediates and the input block.
    layer_bytes = sum(math.prod(p.shape[1:]) * p.dtype.itemsize for p in plist)
    act_bytes = tb * S * D * 4
    x_block_bytes = tb * S * D * 2
    interm_bytes = tb * S * (3 * D + mlp_dim + 4 * D) * 4 + 3 * heads * S * S * 4
    est = int(2 * layer_bytes + 2 * x_block_bytes + act_bytes + interm_bytes
              + D * Cp * 2)
    vmem_limit = int(min(96 * 2 ** 20, max(32 * 2 ** 20, 1.5 * est)))
    # TODO(synk): on v7x (64 MiB VMEM/TC) prefer a smaller tb / single-buffered
    #             MLP weights (pl.Buffered(1)) rather than raising this limit.

    kernel = functools.partial(
        _encoder_stack_kernel, heads=heads, head_dim=head_dim,
        inv_scale=inv_scale, tb=tb, s_pad=S)

    out = pl.pallas_call(
        kernel,
        out_shape=jax.ShapeDtypeStruct((nb, tb, Cp), jnp.float32),
        grid=(nb, L),
        in_specs=[pl.BlockSpec((tb, S, D), lambda b, l: (b, 0, 0)),
                  const_spec(base),
                  const_spec(mask)]
                 + [layer_spec(p) for p in plist]
                 + [const_spec(ln_g), const_spec(ln_b),
                    const_spec(cls_w), const_spec(cls_b)],
        out_specs=pl.BlockSpec((1, tb, Cp), lambda b, l: (b, 0, 0)),
        scratch_shapes=[pltpu.VMEM((tb * S, D), jnp.float32)],
        compiler_params=pltpu.CompilerParams(
            dimension_semantics=("parallel", "arbitrary"),
            vmem_limit_bytes=vmem_limit),
    )(emb, base, mask, *plist, ln_g, ln_b, cls_w, cls_b)
    return out.reshape(B, Cp)


# ----------------------------------------------------------------------------
# Model glue (plain JAX: reshapes, parameter setup)
# ----------------------------------------------------------------------------
def extract_patches(x, patch):
    """x: (B, C, H, W) NCHW -> (B, N, C*patch*patch), row-major patch order,
    matching Conv2d(kernel=patch, stride=patch) + permute(0,2,3,1) + reshape."""
    B, C, H, W = x.shape
    gh, gw = H // patch, W // patch
    x = x.reshape(B, C, gh, patch, gw, patch)
    x = x.transpose(0, 2, 4, 1, 3, 5)  # (B, gh, gw, C, p, p)
    return x.reshape(B, gh * gw, C * patch * patch)


def _round_up(a, m):
    return ((a + m - 1) // m) * m


def _pick_tb(batch, target=4):
    tb = min(target, batch)
    while batch % tb:
        tb -= 1
    return tb


def init_params(key, *, in_ch, patch, emb_dim, mlp_dim, heads, num_layers,
                num_classes, num_patches, classes_pad=128):
    del heads  # head split is a reshape of the same (D, D) projections

    def nrm(k, shape, scale=0.02):
        return (scale * jax.random.normal(k, shape)).astype(jnp.float32)

    keys = jax.random.split(key, 4)
    K = in_ch * patch * patch
    Cp = max(classes_pad, num_classes)

    cls_w = nrm(keys[2], (emb_dim, num_classes))
    cls_w_pad = jnp.zeros((emb_dim, Cp), jnp.float32).at[:, :num_classes].set(cls_w)

    params = {
        "embed_w": nrm(keys[0], (K, emb_dim)).astype(jnp.bfloat16),
        "embed_b": jnp.zeros((1, emb_dim), jnp.float32),
        "cls_token": jnp.zeros((1, 1, emb_dim), jnp.float32),
        "pos_emb": nrm(keys[1], (1, num_patches + 1, emb_dim)),
        "ln_g": jnp.ones((1, emb_dim), jnp.float32),
        "ln_b": jnp.zeros((1, emb_dim), jnp.float32),
        "cls_w": cls_w_pad.astype(jnp.bfloat16),
        "cls_b": jnp.zeros((1, Cp), jnp.float32),
        "num_classes": num_classes,
    }

    L = num_layers
    lkeys = jax.random.split(keys[3], L)
    wqkv_l, wo_l, w1_l, w2_l = [], [], [], []
    for i in range(L):
        sk = jax.random.split(lkeys[i], 6)
        wq = nrm(sk[0], (emb_dim, emb_dim))
        wk = nrm(sk[1], (emb_dim, emb_dim))
        wv = nrm(sk[2], (emb_dim, emb_dim))
        wqkv_l.append(jnp.concatenate([wq, wk, wv], axis=1))   # fused QKV
        wo_l.append(nrm(sk[3], (emb_dim, emb_dim)))
        w1_l.append(nrm(sk[4], (emb_dim, mlp_dim)))
        w2_l.append(nrm(sk[5], (mlp_dim, emb_dim)))

    params["layers"] = {
        "g1": jnp.ones((L, 1, emb_dim), jnp.float32),
        "b1": jnp.zeros((L, 1, emb_dim), jnp.float32),
        "wqkv": jnp.stack(wqkv_l).astype(jnp.bfloat16),
        "bqkv": jnp.zeros((L, 1, 3 * emb_dim), jnp.float32),
        "wo": jnp.stack(wo_l).astype(jnp.bfloat16),
        "bo": jnp.zeros((L, 1, emb_dim), jnp.float32),
        "g2": jnp.ones((L, 1, emb_dim), jnp.float32),
        "b2": jnp.zeros((L, 1, emb_dim), jnp.float32),
        "w1": jnp.stack(w1_l).astype(jnp.bfloat16),
        "bb1": jnp.zeros((L, 1, mlp_dim), jnp.float32),
        "w2": jnp.stack(w2_l).astype(jnp.bfloat16),
        "bb2": jnp.zeros((L, 1, emb_dim), jnp.float32),
    }
    return params


def vit_forward(x, params, *, patch, heads, tb_target=4):
    B = x.shape[0]
    emb_dim = params["embed_b"].shape[1]
    num_classes = params["num_classes"]

    # Patch embedding (conv kernel=stride=patch <=> per-patch matmul).
    patches = extract_patches(x, patch)                       # (B, N, K)
    _, N, _ = patches.shape
    seq_len = N + 1
    s_pad = _round_up(seq_len, 8)

    # Zero row 0 (cls slot) + zero sublane-pad rows; the matmul then emits
    # zeros there and the "base" tensor supplies cls/pos/conv-bias terms.
    patches_p = jnp.pad(
        patches, ((0, 0), (1, s_pad - seq_len), (0, 0))).astype(jnp.bfloat16)
    emb = embed_pallas(patches_p, params["embed_w"])          # (B, s_pad, D) bf16

    # base[t] = pos_emb[t] (+ cls_token at t=0, + conv bias at 1..N), 0 on pads.
    pos = params["pos_emb"][0]                                # (seq_len, D)
    base = jnp.zeros((s_pad, emb_dim), jnp.float32)
    base = base.at[:seq_len].set(pos)
    base = base.at[0].add(params["cls_token"][0, 0])
    base = base.at[1:seq_len].add(params["embed_b"][0])
    base = base[None]                                         # (1, s_pad, D)

    # Additive key mask: 0 for real tokens, -1e30 for sublane-padding rows.
    mask = jnp.where(jnp.arange(s_pad) < seq_len, 0.0, -1e30)
    mask = mask.astype(jnp.float32)[None]                     # (1, s_pad)

    tb = _pick_tb(B, tb_target)
    logits_pad = encoder_stack_pallas(
        emb, base, mask, params["layers"],
        params["ln_g"], params["ln_b"], params["cls_w"], params["cls_b"],
        heads=heads, tb=tb)
    return logits_pad[:, :num_classes]


if __name__ == "__main__":
    # Small ViT config: image 16x16, patch 8 -> 4 patches, seq=5 (padded to 8)
    B, C_IN, IMG, PATCH = 2, 3, 16, 8
    EMB, MLP, HEADS, LAYERS, CLASSES = 32, 64, 4, 2, 10
    NUM_PATCHES = (IMG // PATCH) ** 2

    key = jax.random.PRNGKey(0)
    kx, kp = jax.random.split(key)
    x = jax.random.normal(kx, (B, C_IN, IMG, IMG), dtype=jnp.float32)
    params = init_params(
        kp, in_ch=C_IN, patch=PATCH, emb_dim=EMB, mlp_dim=MLP, heads=HEADS,
        num_layers=LAYERS, num_classes=CLASSES, num_patches=NUM_PATCHES,
    )

    logits = vit_forward(x, params, patch=PATCH, heads=HEADS)
    logits = jax.block_until_ready(logits)
    assert logits.shape == (B, CLASSES)
    print("KERNEL_OK")
</pallas_src>

<mosaic_0001>
module attributes {stable_mosaic.version = 11 : i64} {
  func.func @_embed_kernel(%arg0: i32, %arg1: memref<1x8x192xbf16, #tpu.memory_space<vmem>>, %arg2: memref<192x32xbf16, #tpu.memory_space<vmem>>, %arg3: memref<1x8x32xbf16, #tpu.memory_space<vmem>>) attributes {dimension_semantics = [#tpu.dimension_semantics<parallel>], iteration_bounds = array<i64: 2>, scalar_prefetch = 0 : i64, scratch_operands = 0 : i64, tpu.core_type = #tpu.core_type<tc>, window_params = [{transform_indices = @transform_0, window_bounds = array<i64: 1, 8, 192>}, {pipeline_mode = #tpu.pipeline_mode<synchronous>, transform_indices = @transform_1, window_bounds = array<i64: 192, 32>}, {transform_indices = @transform_2, window_bounds = array<i64: 1, 8, 32>}]} {
    %c0 = arith.constant 0 : index
    %c0_0 = arith.constant 0 : index
    %c0_1 = arith.constant 0 : index
    %0 = vector.load %arg1[%c0, %c0_0, %c0_1] : memref<1x8x192xbf16, #tpu.memory_space<vmem>>, vector<1x8x192xbf16>
    %1 = vector.shape_cast %0 : vector<1x8x192xbf16> to vector<8x192xbf16>
    %c0_2 = arith.constant 0 : index
    %c0_3 = arith.constant 0 : index
    %2 = vector.load %arg2[%c0_2, %c0_3] : memref<192x32xbf16, #tpu.memory_space<vmem>>, vector<192x32xbf16>
    %cst = arith.constant dense<0.000000e+00> : vector<8x32xf32>
    %3 = tpu.matmul %1, %2, %cst {dimension_numbers = #tpu.dot_dimension_numbers<[1], [0], [0], [1], [0, 0, 1, 1], [], []>} : vector<8x192xbf16>, vector<192x32xbf16>, vector<8x32xf32> -> vector<8x32xf32>
    %4 = arith.truncf %3 : vector<8x32xf32> to vector<8x32xbf16>
    %c0_4 = arith.constant 0 : index
    %c0_5 = arith.constant 0 : index
    %c0_6 = arith.constant 0 : index
    %5 = vector.load %arg3[%c0_4, %c0_5, %c0_6] : memref<1x8x32xbf16, #tpu.memory_space<vmem>>, vector<1x8x32xbf16>
    %6 = vector.shape_cast %5 : vector<1x8x32xbf16> to vector<8x32xbf16>
    %7 = vector.shape_cast %4 : vector<8x32xbf16> to vector<1x8x32xbf16>
    tpu.vector_store %arg3[%c0_4, %c0_5, %c0_6], %7 {strides = array<i32>} : memref<1x8x32xbf16, #tpu.memory_space<vmem>>, vector<1x8x32xbf16>,
    return
  }
  func.func @transform_0(%arg0: i32) -> (i32, i32, i32) {
    %c0_i32 = arith.constant 0 : i32
    %c0_i32_0 = arith.constant 0 : i32
    %c0_i32_1 = arith.constant 0 : i32
    return %arg0, %c0_i32, %c0_i32_0 : i32, i32, i32
  }
  func.func @transform_1(%arg0: i32) -> (i32, i32) {
    %c0_i32 = arith.constant 0 : i32
    %c0_i32_0 = arith.constant 0 : i32
    %c0_i32_1 = arith.constant 0 : i32
    return %c0_i32, %c0_i32_0 : i32, i32
  }
  func.func @transform_2(%arg0: i32) -> (i32, i32, i32) {
    %c0_i32 = arith.constant 0 : i32
    %c0_i32_0 = arith.constant 0 : i32
    %c0_i32_1 = arith.constant 0 : i32
    return %arg0, %c0_i32, %c0_i32_0 : i32, i32, i32
  }
}

</mosaic_0001>

<bundles_post_ra>
// kernel: tpu_custom_call.1
= control target key start
LH: loop header
LB: loop body
LE: loop exit
PB: predicated region body
PF: predicated region fallthrough
CT: control target
= control target key end

     0   :  { %7 = vsyncpa [#allocation3], 0  ;;  %s664_s0 = inlined_call_operand.vmem [shape: bf16[2,8,192], index: 0, kind: input, shape index: {}]   ;;  %s665_s1 = inlined_call_operand.vmem [shape: bf16[192,32], index: 1, kind: input, shape index: {}]   ;;  %s666_s2 = inlined_call_operand.hbm [shape: bf16[2,8,32], index: 2, kind: output, shape index: {}]  }
   0x1   :  { %9 = vsyncpa [#allocation3 + $0x1], 0  ;;  %s528_s9 = smov 0   ;;  %s530_s10 = smov 0  }
   0x2   :  { %s532_s11 = smov 0   ;;  %s534_s12 = smov 0  }
   0x3 LB: > { %s549_s13 = sadd.s32 4294967295, %s509_s12   ;;  %s366_s14 = sadd.s32 4294967294, %s509_s12   ;;  %s509_s12 = sphi %s534_s12, %s672_s12   ;;  %s505_s11 = sphi %s532_s11, %s671_s11   ;;  %s501_s10 = sphi %s530_s10, %s670_s10   ;;  %s497_s9 = sphi %s528_s9, %s669_s9  }
   0x4   : > { %s553_s15 = sadd.s32 1, %s509_s12   ;;  %s69_s16 = sadd.s32 1, %s505_s11 }
   0x5   : > { %s66_s17 = ssub.s32 %s509_s12, %s553_s15  ;;  %p79_p0 = scmp.ne.s32.totalorder %s505_s11, %s501_s10 }
   0x6   : > { %p67_p1 = scmp.eq.s32.totalorder %s66_s17, 0  ;;  %p80_p2 = scmp.eq.s32.totalorder %s549_s13, 1 }
   0x7   : > { %p85_p3 = scmp.ne.s32.totalorder %s501_s10, %s497_s9  ;;  %p86_p4 = scmp.eq.s32.totalorder %s366_s14, 1 }
   0x8   : > { %s564_s18 = scalar_select %p67_p1, %s505_s11, %s69_s16  }
   0x9   : > { %p566_p5 = por %p80_p2, %p79_p0  ;;  %p570_p6 = por %p86_p4, %p85_p3 }
   0xa   : > { %p369_p7 = scmp.ge.s32.totalorder %s509_s12, 1  ;;  %p115_p8 = scmp.lt.s32.totalorder %s509_s12, 3 }
   0xc   : > { %p116_p9 = pnand %p369_p7, %p115_p8 }
   0xd   : > { %v433_v0 = vld [vmem:[%s665_s1] sm:$0xff] (!%p116_p9)   ;;  %v511_v1 = vmov (!%p116_p9), 0   ;;  %p137_p10 = scmp.lt.s32.totalorder (!%p116_p9), %s549_s13, 1  ;;  %v434_v2 = vld [vmem:[%s665_s1 + $0x8] sm:$0xff] (!%p116_p9)   ;;  %v435_v3 = vld [vmem:[%s665_s1 + $0x10] sm:$0xff] (!%p116_p9)   ;;  %vm246_vm0 = vcmask (!%p116_p9), 523264  }
   0xe   : > { %119 = sbr.rel (%p116_p9) target bundleno = 290 (0x122), region = 28  ;;  %250 = vmatprep.subr.bf16.mxu0 (!%p116_p9), %v511_v1  ;;  %v436_v4 = vld [vmem:[%s665_s1 + $0x18] sm:$0xff] (!%p116_p9)   ;;  %v437_v7 = vld [vmem:[%s665_s1 + $0x20] sm:$0xff] (!%p116_p9)   ;;  %v438_v8 = vld [vmem:[%s665_s1 + $0x28] sm:$0xff] (!%p116_p9)   ;;  %s389_s5 = sshll.u32 (!%p116_p9), %s549_s13, 6  ;;  %vm291_vm1 = vcmask (!%p116_p9), 257024  }
   0xf   : > { %251 = vmatpush1.bf16.msra.mxu0 (!%p116_p9), %v433_v0  ;;  %v439_v9 = vld [vmem:[%s665_s1 + $0x30] sm:$0xff] (!%p116_p9)   ;;  %v440_v10 = vld [vmem:[%s665_s1 + $0x38] sm:$0xff] (!%p116_p9)   ;;  %v441_v11 = vld [vmem:[%s665_s1 + $0x40] sm:$0xff] (!%p116_p9)   ;;  %s622_s16 = scalar_lea.hbm (!%p116_p9), %s666_s2, %s389_s5  ;;  %s512_s21 = smov (!%p116_p9), [#allocation2]  }
  0x10   : > { %252 = vmatprep.subr.bf16.mxu0 (!%p116_p9), %v511_v1  ;;  %v442_v12 = vld [vmem:[%s665_s1 + $0x48] sm:$0xff] (!%p116_p9)   ;;  %v443_v13 = vld [vmem:[%s665_s1 + $0x50] sm:$0xff] (!%p116_p9)   ;;  %v444_v14 = vld [vmem:[%s665_s1 + $0x58] sm:$0xff] (!%p116_p9)   ;;  %s451_s22 = sshll.u32 (!%p116_p9), %s512_s21, 4  ;;  %s452_s22 = int_to_ptr.vmem [resolvable:$false] %s451_s22 }
  0x11   : > { %s453_s23 = scalar_lea.vmem (!%p116_p9), %s452_s22, 128 }
  0x13   : > { %253 = vmatpush1.bf16.msra.mxu0 (!%p116_p9), %v434_v2 }
  0x14   : > { %254 = vmatprep.subr.bf16.mxu0 (!%p116_p9), %v511_v1 }
  0x15   : > { %s138_s25 = scalar_select %p137_p10, %s549_s13, 1 }
  0x17   : > { %s392_s28 = sshll.u32 %s138_s25, 3  ;;  %255 = vmatpush1.bf16.msra.mxu0 %v435_v3 }
  0x18   : > { %s141_s3 = scalar_lea.vmem %s664_s0, %s392_s28  ;;  %256 = vmatprep.subr.bf16.mxu0 %v511_v1 }
  0x19   : > { %v143_v5 = vld [vmem:[%s141_s3] sm:$0xff]  ;;  %s134_s3 = sand.u32 1, %s501_s10  }
  0x1a   : > { %v374_v6 = vcombine.high %v143_v5, %v143_v5  ;;  %v373_v15 = vcombine.low %v143_v5, %v143_v5  ;;  %s370_s4 = sshll.u32 %s134_s3, 2  ;;  %s294_s13 = scalar_lea.sflag [#allocation3], %s134_s3 }
  0x1b   : > { %257 = vmatpush1.bf16.msra.mxu0 %v436_v4  ;;  %s136_s6 = scalar_lea.vmem [#allocation2], %s370_s4 }
  0x1c   : > { %258 = vmatprep.subr.bf16.mxu0 %v511_v1  ;;  %387 = vmatprep.mubr.msk.bf16.mxu0 %vm246_vm0, %v374_v6  ;;  %s307_s7 = sshll.u32 %s136_s6, 4  ;;  %s624_s7 = int_to_ptr.vmem [resolvable:$true] %s307_s7 }
  0x1d   : > { %s447_s17 = scalar_lea.vmem %s624_s7, 64  ;;  %p454_p0 = scmp.lt.s32.totalorder %s624_s7, %s452_s22 }
  0x1e   : > { %p448_p11 = scmp.ne.s32.totalorder %s624_s7, %s447_s17  ;;  %p455_p1 = scmp.lt.s32.totalorder %s453_s23, %s447_s17 }
  0x1f   : > { %259 = vmatpush1.bf16.msra.mxu0 %v437_v7 }
  0x20   : > { %260 = vmatprep.subr.bf16.mxu0 %v511_v1  ;;  %p449_p12 = pnand %p448_p11, %p566_p5  ;;  %p456_p2 = por %p455_p1, %p454_p0 }
  0x22   : > { %p450_p13 = pneg %p449_p12 }
  0x23   : > { %261 = vmatpush1.bf16.msra.mxu0 %v438_v8 }
  0x24   : > { %262 = vmatprep.subr.bf16.mxu0 %v511_v1  ;;  %p457_p3 = pnand %p456_p2, %p450_p13 }
  0x27   : > { %263 = vmatpush1.bf16.msra.mxu0 %v439_v9 }
  0x28   : > { %264 = vmatprep.subr.bf16.mxu0 %v511_v1 }
  0x2b   : > { %265 = vmatpush1.bf16.msra.mxu0 %v440_v10 }
  0x2c   : > { %266 = vmatprep.subr.bf16.mxu0 %v511_v1 }
  0x2f   : > { %267 = vmatpush1.bf16.msra.mxu0 %v441_v11 }
  0x30   : > { %268 = vmatprep.subr.bf16.mxu0 %v511_v1 }
  0x33   : > { %269 = vmatpush1.bf16.msra.mxu0 %v442_v12 }
  0x34   : > { %270 = vmatprep.subr.bf16.mxu0 %v511_v1 }
  0x37   : > { %271 = vmatpush1.bf16.msra.mxu0 %v443_v13 }
  0x38   : > { %272 = vmatprep.subr.bf16.mxu0 %v511_v1 }
  0x3b   : > { %273 = vmatpush1.bf16.msra.mxu0 %v444_v14 }
  0x3e   : > { %283 = vmatmul.mubr.bf16.vlgmr.msra.gmra.mrb[0].mxu0 %v373_v15 }
 0x111   : > { %v284_v16 = vpop.f32.mrb[0].mxu0 }
 0x112   : > { %v290_v17 = vpack.c.bf16 %v284_v16, %v284_v16  ;;  %v286_v18 = vpop.f32.mrb[1].mxu0 }
 0x113   : > { %v287_v19 = vpop.f32.mrb[2].mxu0 }
 0x114   : > { %v288_v20 = vpop.f32.mrb[3].mxu0  ;;  %292 = vst.msk [vmem:[%s136_s6] sm:$0xf] %vm291_vm1, %v290_v17 }
 0x115   : > { %460 = shalt.err (!%p457_p3)
}
 0x116   : > { %s461_s24 = scalar_lea.hbm %s622_s16, 64  ;;  %s465_s27 = scalar_lea.hbm %s666_s2, 128 }
 0x117   : > { %p462_p4 = scmp.ne.s32.totalorder %s622_s16, %s461_s24  ;;  %p466_p9 = scmp.lt.u32.totalorder %s622_s16, %s666_s2 }
 0x118   : > { %p467_p10 = scmp.lt.u32.totalorder %s465_s27, %s461_s24  ;;  %p469_p12 = scmp.lt.u32.totalorder %s461_s24, %s622_s16 }
 0x119   : > { %p463_p7 = pnand %p462_p4, %p566_p5 }
 0x11a   : > { %p468_p11 = por %p467_p10, %p466_p9 }
 0x11b   : > { %p464_p8 = pneg %p463_p7 }
 0x11c   : > { %p470_p13 = por %p469_p12, %p468_p11 }
 0x11e   : > { %p471_p0 = pnand %p470_p13, %p464_p8 }
 0x120   : > { %474 = shalt.err (!%p471_p0)
}
 0x121   : > { %393 = dma.vmem_to_hbm [thread:$0]  (%p566_p5), %s624_s7, 64, %s622_s16, %s294_s13  }
 0x122 PF: > { %p399_p1 = scmp.ge.s32.totalorder %s509_s12, 2  ;;  %s319_s30 = sand.u32 1, %s497_s9  }
 0x123   : > { %s320_s3 = scalar_lea.sflag [#allocation3], %s319_s30 }
 0x124   : > { %p396_p2 = pnand %p399_p1, %p570_p6 }
 0x126   : > { %492 = dma.done.wait (!%p396_p2), %s320_s3, 64  }
 0x127   : > { %494 = vsyncadd (!%p396_p2), %s320_s3, 4294967232  ;;  %p12_p3 = scmp.ge.s32.totalorder %s553_s15, 4   ;;  %s669_s9 = smov %s501_s10 }
 0x128   : > { %s670_s10 = smov %s505_s11  ;;  %s671_s11 = smov %s564_s18 }
 0x129   : > { %s672_s12 = smov %s553_s15  ;;  %14 = sbr.rel (!%p12_p3) target bundleno = 3 (0x3), region = 63 }
 0x130   :  { %325 = vsyncpa [#allocation3], 1 }
 0x131   :  { %327 = vsyncpa [#allocation3 + $0x1], 1 }

</bundles_post_ra>
